<compile_context>
chip_gen: v5e
topology: v5e:2x2
jax: 0.10.0
libtpu: 0.0.40
codegen_flags: <defaults>
</compile_context>

<pallas_src>
import functools

import jax
import jax.numpy as jnp
from jax.experimental import pallas as pl
from jax.experimental.pallas import tpu as pltpu


def _round_up(x, m):
    return (x + m - 1) // m * m


def _make_ce_kernel(N, C, tn, ignore_index, eps, has_weight, need_wvec, need_wsum):
    """Build a cross-entropy kernel specialized on the static configuration.

    Ref order: logits (tn,C), targets (tn,1) i32, [w_t (tn,1)], [weight (1,C)],
               loss_out (tn,1), [wsum_out (tn,1)].
    """

    def kernel(*refs):
        it = iter(refs)
        logits_ref = next(it)
        targets_ref = next(it)
        wt_ref = next(it) if has_weight else None
        wvec_ref = next(it) if need_wvec else None
        loss_ref = next(it)
        wsum_ref = next(it) if need_wsum else None

        logits = logits_ref[...].astype(jnp.float32)            # (tn, C)
        targets = targets_ref[...]                              # (tn, 1) int32

        # Row validity: target != ignore_index AND row is inside the real N
        # (the last grid step may read a ragged tail block of garbage rows).
        row0 = pl.program_id(0) * tn
        row_ids = row0 + jax.lax.broadcasted_iota(jnp.int32, (tn, 1), 0)
        valid = jnp.logical_and(targets != ignore_index, row_ids < N)

        # Numerically stable log-softmax pieces; full logp is never materialized.
        m = jnp.max(logits, axis=-1, keepdims=True)              # (tn, 1)
        shifted = logits - m                                     # (tn, C)
        lse = jnp.log(jnp.sum(jnp.exp(shifted), axis=-1, keepdims=True))

        # Target-logit "gather" via compare + select (no float one-hot multiply).
        # NOTE: out-of-range targets (t >= C) silently give -logp_t = lse instead
        # of erroring like PyTorch.
        class_ids = jax.lax.broadcasted_iota(jnp.int32, (tn, C), 1)
        tmask = class_ids == targets                              # (tn, C) bool
        shifted_t = jnp.sum(jnp.where(tmask, shifted, 0.0), axis=-1, keepdims=True)
        neg_logp_t = lse - shifted_t                              # (tn, 1)

        if has_weight:
            w_t = wt_ref[...].astype(jnp.float32)                 # (tn, 1)
            nll = neg_logp_t * w_t
        else:
            w_t = None
            nll = neg_logp_t
        nll = jnp.where(valid, nll, 0.0)

        if eps > 0.0:
            # sum_c w_c * (-logp_c) = sum(w) * lse - sum_c w_c * shifted_c
            if need_wvec:
                wvec = wvec_ref[...].astype(jnp.float32)          # (1, C)
                sum_w = jnp.sum(wvec, axis=-1, keepdims=True)     # (1, 1)
                dot_ws = jnp.sum(shifted * wvec, axis=-1, keepdims=True)
                smooth = sum_w * lse - dot_ws
            else:
                smooth = float(C) * lse - jnp.sum(shifted, axis=-1, keepdims=True)
            smooth = jnp.where(valid, smooth, 0.0)
            per_sample = (1.0 - eps) * nll + (eps / float(C)) * smooth
        else:
            per_sample = nll

        loss_ref[...] = per_sample

        if need_wsum:
            if has_weight:
                wsum_ref[...] = jnp.where(valid, w_t, 0.0)
            else:
                wsum_ref[...] = valid.astype(jnp.float32)

    return kernel


def _ce_pallas(logits2d, targets1d, weight1d, ignore_index, eps, need_wsum,
               block_rows=None):
    """Per-row weighted CE pieces over an [N, C] logits slab.

    Returns (per_sample[N], wsum[N] or None). No padding / dtype conversion of
    the logits happens on the host; the logits block DMA keeps the input dtype.
    """
    N, C = logits2d.shape
    has_weight = weight1d is not None
    need_wvec = has_weight and eps > 0.0

    itemsize = jnp.dtype(logits2d.dtype).itemsize
    if block_rows is None:
        # ~2 MiB logits blocks (pipelining sweet spot), clamped to [8, 1024] rows.
        tn = (2 * 1024 * 1024) // max(1, C * itemsize)
        tn = max(8, min(1024, (tn // 8) * 8))
    else:
        tn = max(8, _round_up(int(block_rows), 8))
    tn = min(tn, _round_up(N, 8))
    grid = (pl.cdiv(N, tn),)

    targets2d = targets1d.astype(jnp.int32).reshape(N, 1)

    inputs = [logits2d, targets2d]
    in_specs = [
        pl.BlockSpec((tn, C), lambda i: (i, 0)),
        pl.BlockSpec((tn, 1), lambda i: (i, 0)),
    ]
    if has_weight:
        w = weight1d.astype(jnp.float32)
        t_safe = jnp.clip(targets1d.astype(jnp.int32), 0, C - 1)
        inputs.append(w[t_safe].reshape(N, 1))   # tiny N-element gather on host
        in_specs.append(pl.BlockSpec((tn, 1), lambda i: (i, 0)))
        if need_wvec:
            inputs.append(w.reshape(1, C))
            in_specs.append(pl.BlockSpec((1, C), lambda i: (0, 0)))

    out_shape = [jax.ShapeDtypeStruct((N, 1), jnp.float32)]
    out_specs = [pl.BlockSpec((tn, 1), lambda i: (i, 0))]
    if need_wsum:
        out_shape.append(jax.ShapeDtypeStruct((N, 1), jnp.float32))
        out_specs.append(pl.BlockSpec((tn, 1), lambda i: (i, 0)))

    kernel = _make_ce_kernel(N, C, tn, int(ignore_index), float(eps),
                             has_weight, need_wvec, need_wsum)

    outs = pl.pallas_call(
        kernel,
        out_shape=tuple(out_shape),
        grid_spec=pltpu.PrefetchScalarGridSpec(
            num_scalar_prefetch=0,
            grid=grid,
            in_specs=in_specs,
            out_specs=out_specs,
        ),
        compiler_params=pltpu.CompilerParams(
            dimension_semantics=("parallel",),
            vmem_limit_bytes=64 * 1024 * 1024,
        ),
    )(*inputs)

    per_sample = outs[0][:, 0]
    wsum = outs[1][:, 0] if need_wsum else None
    return per_sample, wsum


class CrossEntropyLoss:
    """JAX/Pallas port of the PyTorch CrossEntropyLoss module (forward only)."""

    def __init__(self, num_classes=None, weight=None, ignore_index=-100,
                 reduction='mean', label_smoothing=0.0):
        self.num_classes = num_classes
        self.weight = None if weight is None else jnp.asarray(weight, jnp.float32)
        self.ignore_index = int(ignore_index)
        self.reduction = reduction
        self.label_smoothing = float(label_smoothing)

    def __call__(self, outputs, batch):
        if 'logits' in outputs:
            logits = outputs['logits']
        else:
            raise ValueError("Outputs must contain 'logits'")
        if 'labels' in batch:
            targets = batch['labels']
        elif 'answers' in batch:
            targets = batch['answers']
        elif 'caption_ids' in batch:
            targets = batch['caption_ids']
        else:
            raise ValueError("Batch must contain 'labels', 'answers', or 'caption_ids'")

        if logits.ndim == 2:
            return self._loss_2d(logits, targets)
        elif logits.ndim == 3:
            b, s, v = logits.shape
            return self._loss_2d(logits.reshape(-1, v), targets.reshape(-1))
        else:
            raise ValueError(f'Unsupported logits dimension: {logits.ndim}')

    def _loss_2d(self, logits, targets):
        need_wsum = (self.reduction == 'mean')
        per_sample, wsum = _ce_pallas(logits, targets, self.weight,
                                      self.ignore_index, self.label_smoothing,
                                      need_wsum)
        if self.reduction == 'none':
            return per_sample
        elif self.reduction == 'sum':
            return jnp.sum(per_sample)
        elif self.reduction == 'mean':
            # NOTE: all rows ignored -> 0/0 = NaN (matches PyTorch).
            return jnp.sum(per_sample) / jnp.sum(wsum)
        else:
            raise ValueError(f'Unsupported reduction: {self.reduction}')


def _reference_ce(logits, targets, weight, ignore_index, reduction, label_smoothing):
    """Pure-JAX reference matching F.cross_entropy semantics (for the self-check)."""
    N, C = logits.shape
    logp = jax.nn.log_softmax(logits.astype(jnp.float32), axis=-1)
    valid = (targets != ignore_index)
    t_safe = jnp.where(valid, targets, 0)
    logp_t = jnp.take_along_axis(logp, t_safe[:, None], axis=-1)[:, 0]
    w_t = weight[t_safe]
    vf = valid.astype(jnp.float32)
    nll = -logp_t * w_t * vf
    smooth = -(logp * weight[None, :]).sum(-1) * vf
    per = (1.0 - label_smoothing) * nll + (label_smoothing / C) * smooth
    wsum = w_t * vf
    if reduction == 'mean':
        return per.sum() / wsum.sum()
    if reduction == 'sum':
        return per.sum()
    return per


if __name__ == "__main__":
    key = jax.random.PRNGKey(0)
    k1, k2, k3 = jax.random.split(key, 3)

    # 1) Generation path: weighted, label-smoothed, mean reduction.
    batch, seq, vocab = 2, 8, 32
    logits = jax.random.normal(k1, (batch, seq, vocab), dtype=jnp.float32)
    labels = jax.random.randint(k2, (batch, seq), 0, vocab, dtype=jnp.int32)
    pad_mask = jax.random.uniform(k3, (batch, seq)) < 0.2
    labels = jnp.where(pad_mask, -100, labels)
    weight = jnp.linspace(0.5, 1.5, vocab, dtype=jnp.float32)

    loss_fn = CrossEntropyLoss(num_classes=vocab, weight=weight,
                               ignore_index=-100, reduction='mean',
                               label_smoothing=0.1)
    loss = jax.block_until_ready(loss_fn({'logits': logits}, {'labels': labels}))
    ref = _reference_ce(logits.reshape(-1, vocab), labels.reshape(-1), weight,
                        ignore_index=-100, reduction='mean', label_smoothing=0.1)
    assert jnp.allclose(loss, ref, atol=1e-4, rtol=1e-4), (loss, ref)

    # 2) Classification path: no weight, no smoothing (specialized kernel), mean.
    cls_logits = jax.random.normal(k1, (8, vocab), dtype=jnp.float32)
    cls_labels = jax.random.randint(k2, (8,), 0, vocab, dtype=jnp.int32)
    cls_loss_fn = CrossEntropyLoss(num_classes=vocab, ignore_index=-100,
                                   reduction='mean', label_smoothing=0.0)
    cls_loss = jax.block_until_ready(cls_loss_fn({'logits': cls_logits},
                                                 {'labels': cls_labels}))
    cls_ref = _reference_ce(cls_logits, cls_labels, jnp.ones((vocab,), jnp.float32),
                            ignore_index=-100, reduction='mean', label_smoothing=0.0)
    assert jnp.allclose(cls_loss, cls_ref, atol=1e-4, rtol=1e-4), (cls_loss, cls_ref)

    # 3) Sum reduction through the class (weighted + smoothed).
    sum_fn = CrossEntropyLoss(weight=weight, ignore_index=-100,
                              reduction='sum', label_smoothing=0.1)
    sum_loss = jax.block_until_ready(sum_fn({'logits': logits}, {'labels': labels}))
    sum_ref = _reference_ce(logits.reshape(-1, vocab), labels.reshape(-1), weight,
                            ignore_index=-100, reduction='sum', label_smoothing=0.1)
    assert jnp.allclose(sum_loss, sum_ref, atol=1e-3, rtol=1e-4), (sum_loss, sum_ref)

    # 4) Multi-tile + ragged tail + bf16 logits (direct call with small row blocks).
    N3, C3 = 19, 40
    lo3 = jax.random.normal(k1, (N3, C3), dtype=jnp.float32).astype(jnp.bfloat16)
    tg3 = jax.random.randint(k2, (N3,), 0, C3, dtype=jnp.int32)
    tg3 = tg3.at[::5].set(-100)
    w3 = jnp.linspace(0.5, 2.0, C3, dtype=jnp.float32)
    per3, wsum3 = _ce_pallas(lo3, tg3, w3, -100, 0.05, True, block_rows=8)
    per3 = jax.block_until_ready(per3)
    ref3 = _reference_ce(lo3.astype(jnp.float32), tg3, w3,
                         ignore_index=-100, reduction='none', label_smoothing=0.05)
    refw3 = jnp.where(tg3 != -100, w3[jnp.clip(tg3, 0, C3 - 1)], 0.0)
    assert jnp.allclose(per3, ref3, atol=2e-3, rtol=2e-3), (per3, ref3)
    assert jnp.allclose(wsum3, refw3, atol=1e-6), (wsum3, refw3)

    print("KERNEL_OK")
</pallas_src>

<mosaic_0001>
module attributes {stable_mosaic.version = 11 : i64} {
  func.func @kernel(%arg0: i32, %arg1: memref<16x32xf32, #tpu.memory_space<vmem>>, %arg2: memref<16x1xi32, #tpu.memory_space<vmem>>, %arg3: memref<16x1xf32, #tpu.memory_space<vmem>>, %arg4: memref<1x32xf32, #tpu.memory_space<vmem>>, %arg5: memref<16x1xf32, #tpu.memory_space<vmem>>, %arg6: memref<16x1xf32, #tpu.memory_space<vmem>>) attributes {dimension_semantics = [#tpu.dimension_semantics<parallel>], iteration_bounds = array<i64: 1>, scalar_prefetch = 0 : i64, scratch_operands = 0 : i64, tpu.core_type = #tpu.core_type<tc>, window_params = [{transform_indices = @transform_0, window_bounds = array<i64: 16, 32>}, {transform_indices = @transform_1, window_bounds = array<i64: 16, 1>}, {transform_indices = @transform_2, window_bounds = array<i64: 16, 1>}, {pipeline_mode = #tpu.pipeline_mode<synchronous>, transform_indices = @transform_3, window_bounds = array<i64: 1, 32>}, {transform_indices = @transform_4, window_bounds = array<i64: 16, 1>}, {transform_indices = @transform_5, window_bounds = array<i64: 16, 1>}]} {
    %c0 = arith.constant 0 : index
    %c0_0 = arith.constant 0 : index
    %0 = vector.load %arg1[%c0, %c0_0] : memref<16x32xf32, #tpu.memory_space<vmem>>, vector<16x32xf32>
    %c0_1 = arith.constant 0 : index
    %c0_2 = arith.constant 0 : index
    %1 = vector.load %arg2[%c0_1, %c0_2] : memref<16x1xi32, #tpu.memory_space<vmem>>, vector<16x1xi32>
    %c16_i32 = arith.constant 16 : i32
    %2 = arith.muli %arg0, %c16_i32 : i32
    %3 = tpu.iota {dimensions = array<i32: 0>} : vector<16x1xi32>
    %4 = vector.broadcast %2 : i32 to vector<16x1xi32>
    %5 = arith.addi %4, %3 : vector<16x1xi32>
    %c-100_i32 = arith.constant -100 : i32
    %6 = vector.broadcast %c-100_i32 : i32 to vector<16x1xi32>
    %7 = arith.cmpi ne, %1, %6 : vector<16x1xi32>
    %c16_i32_3 = arith.constant 16 : i32
    %8 = vector.broadcast %c16_i32_3 : i32 to vector<16x1xi32>
    %9 = arith.cmpi slt, %5, %8 : vector<16x1xi32>
    %10 = arith.andi %7, %9 : vector<16x1xi1>
    %cst = arith.constant dense<0xFF800000> : vector<16xf32>
    %11 = vector.multi_reduction <maximumf>, %0, %cst [1] : vector<16x32xf32> to vector<16xf32>
    %12 = vector.shape_cast %11 : vector<16xf32> to vector<16x1xf32>
    %13 = vector.broadcast %12 : vector<16x1xf32> to vector<16x32xf32>
    %14 = arith.subf %0, %13 : vector<16x32xf32>
    %15 = math.exp %14 : vector<16x32xf32>
    %cst_4 = arith.constant dense<0.000000e+00> : vector<16xf32>
    %16 = vector.multi_reduction <add>, %15, %cst_4 [1] : vector<16x32xf32> to vector<16xf32>
    %17 = vector.shape_cast %16 : vector<16xf32> to vector<16x1xf32>
    %18 = math.log %17 : vector<16x1xf32>
    %19 = tpu.iota {dimensions = array<i32: 1>} : vector<16x32xi32>
    %20 = vector.broadcast %1 : vector<16x1xi32> to vector<16x32xi32>
    %21 = arith.cmpi eq, %19, %20 : vector<16x32xi32>
    %cst_5 = arith.constant 0.000000e+00 : f32
    %22 = vector.broadcast %cst_5 : f32 to vector<16x32xf32>
    %23 = arith.select %21, %14, %22 : vector<16x32xi1>, vector<16x32xf32>
    %cst_6 = arith.constant dense<0.000000e+00> : vector<16xf32>
    %24 = vector.multi_reduction <add>, %23, %cst_6 [1] : vector<16x32xf32> to vector<16xf32>
    %25 = vector.shape_cast %24 : vector<16xf32> to vector<16x1xf32>
    %26 = arith.subf %18, %25 : vector<16x1xf32>
    %c0_7 = arith.constant 0 : index
    %c0_8 = arith.constant 0 : index
    %27 = vector.load %arg3[%c0_7, %c0_8] : memref<16x1xf32, #tpu.memory_space<vmem>>, vector<16x1xf32>
    %28 = arith.mulf %26, %27 : vector<16x1xf32>
    %cst_9 = arith.constant 0.000000e+00 : f32
    %29 = vector.broadcast %cst_9 : f32 to vector<16x1xf32>
    %30 = arith.select %10, %28, %29 : vector<16x1xi1>, vector<16x1xf32>
    %c0_10 = arith.constant 0 : index
    %c0_11 = arith.constant 0 : index
    %31 = vector.load %arg4[%c0_10, %c0_11] : memref<1x32xf32, #tpu.memory_space<vmem>>, vector<1x32xf32>
    %cst_12 = arith.constant dense<0.000000e+00> : vector<1xf32>
    %32 = vector.multi_reduction <add>, %31, %cst_12 [1] : vector<1x32xf32> to vector<1xf32>
    %33 = vector.shape_cast %32 : vector<1xf32> to vector<1x1xf32>
    %34 = vector.broadcast %31 : vector<1x32xf32> to vector<16x32xf32>
    %35 = arith.mulf %14, %34 : vector<16x32xf32>
    %cst_13 = arith.constant dense<0.000000e+00> : vector<16xf32>
    %36 = vector.multi_reduction <add>, %35, %cst_13 [1] : vector<16x32xf32> to vector<16xf32>
    %37 = vector.shape_cast %36 : vector<16xf32> to vector<16x1xf32>
    %38 = vector.broadcast %33 : vector<1x1xf32> to vector<16x1xf32>
    %39 = arith.mulf %38, %18 : vector<16x1xf32>
    %40 = arith.subf %39, %37 : vector<16x1xf32>
    %cst_14 = arith.constant 0.000000e+00 : f32
    %41 = vector.broadcast %cst_14 : f32 to vector<16x1xf32>
    %42 = arith.select %10, %40, %41 : vector<16x1xi1>, vector<16x1xf32>
    %cst_15 = arith.constant 0.899999976 : f32
    %43 = vector.broadcast %cst_15 : f32 to vector<16x1xf32>
    %44 = arith.mulf %43, %30 : vector<16x1xf32>
    %cst_16 = arith.constant 3.125000e-03 : f32
    %45 = vector.broadcast %cst_16 : f32 to vector<16x1xf32>
    %46 = arith.mulf %45, %42 : vector<16x1xf32>
    %47 = arith.addf %44, %46 : vector<16x1xf32>
    %c0_17 = arith.constant 0 : index
    %c0_18 = arith.constant 0 : index
    %48 = vector.load %arg5[%c0_17, %c0_18] : memref<16x1xf32, #tpu.memory_space<vmem>>, vector<16x1xf32>
    tpu.vector_store %arg5[%c0_17, %c0_18], %47 {strides = array<i32>} : memref<16x1xf32, #tpu.memory_space<vmem>>, vector<16x1xf32>,
    %cst_19 = arith.constant 0.000000e+00 : f32
    %49 = vector.broadcast %cst_19 : f32 to vector<16x1xf32>
    %50 = arith.select %10, %27, %49 : vector<16x1xi1>, vector<16x1xf32>
    %c0_20 = arith.constant 0 : index
    %c0_21 = arith.constant 0 : index
    %51 = vector.load %arg6[%c0_20, %c0_21] : memref<16x1xf32, #tpu.memory_space<vmem>>, vector<16x1xf32>
    tpu.vector_store %arg6[%c0_20, %c0_21], %50 {strides = array<i32>} : memref<16x1xf32, #tpu.memory_space<vmem>>, vector<16x1xf32>,
    return
  }
  func.func @transform_0(%arg0: i32) -> (i32, i32) {
    %c0_i32 = arith.constant 0 : i32
    %c0_i32_0 = arith.constant 0 : i32
    return %arg0, %c0_i32 : i32, i32
  }
  func.func @transform_1(%arg0: i32) -> (i32, i32) {
    %c0_i32 = arith.constant 0 : i32
    %c0_i32_0 = arith.constant 0 : i32
    return %arg0, %c0_i32 : i32, i32
  }
  func.func @transform_2(%arg0: i32) -> (i32, i32) {
    %c0_i32 = arith.constant 0 : i32
    %c0_i32_0 = arith.constant 0 : i32
    return %arg0, %c0_i32 : i32, i32
  }
  func.func @transform_3(%arg0: i32) -> (i32, i32) {
    %c0_i32 = arith.constant 0 : i32
    %c0_i32_0 = arith.constant 0 : i32
    %c0_i32_1 = arith.constant 0 : i32
    return %c0_i32, %c0_i32_0 : i32, i32
  }
  func.func @transform_4(%arg0: i32) -> (i32, i32) {
    %c0_i32 = arith.constant 0 : i32
    %c0_i32_0 = arith.constant 0 : i32
    return %arg0, %c0_i32 : i32, i32
  }
  func.func @transform_5(%arg0: i32) -> (i32, i32) {
    %c0_i32 = arith.constant 0 : i32
    %c0_i32_0 = arith.constant 0 : i32
    return %arg0, %c0_i32 : i32, i32
  }
}

</mosaic_0001>

<bundles_post_ra>
// kernel: tpu_custom_call.1
= control target key start
LH: loop header
LB: loop body
LE: loop exit
PB: predicated region body
PF: predicated region fallthrough
CT: control target
= control target key end

     0   :  { %vm36_vm0 = vcmask 261120   ;;  %v141_v1 = vmov 0   ;;  %vm114_vm2 = vcmask 7168   ;;  %vm86_vm3 = vcmask 253952   ;;  %s244_s0 = inlined_call_operand.vmem [shape: f32[16,32], index: 0, kind: input, shape index: {}]   ;;  %s245_s1 = inlined_call_operand.vmem [shape: s32[16,1], index: 1, kind: input, shape index: {}]   ;;  %s246_s2 = inlined_call_operand.vmem [shape: f32[16,1], index: 2, kind: input, shape index: {}]   ;;  %s247_s5 = inlined_call_operand.vmem [shape: f32[16,1], index: 5, kind: output, shape index: {1}]   ;;  %s248_s3 = inlined_call_operand.vmem [shape: f32[1,32], index: 3, kind: input, shape index: {}]   ;;  %s249_s4 = inlined_call_operand.vmem [shape: f32[16,1], index: 4, kind: output, shape index: {0}]  }
   0x1   :  { %v19_v0 = vld [vmem:[%s244_s0] sm:$0xff]  ;;  %130 = vset.pattern.permute.xlu1 %v141_v1  ;;  %131 = vset.pattern.permute.xlu0 %v141_v1  ;;  %v20_v6 = vld [vmem:[%s244_s0 + $0x8] sm:$0xff]  ;;  %v59_v11 = vlaneseq }
   0x2   :  { %v178_v2 = vld [vmem:[%s245_s1] sm:$0xff]  ;;  %v37_v3 = vsel %vm36_vm0, %v19_v0, -inf  ;;  %v201_v7 = vld [vmem:[%s245_s1 + $0x8] sm:$0xff]  ;;  %v40_v8 = vsel %vm36_vm0, %v20_v6, -inf }
   0x3   :  { %v184_v4 = vld [vmem:[%s246_s2] sm:$0xff]  ;;  %62 = vperm.xlu1 %130, %v178_v2   ;;  %vm30_vm1 = vcmp.ne.s32.totalorder %v178_v2, 4294967196  ;;  %38 = vmax.xlane.f32.xlu0 %v37_v3  ;;  %v60_v12 = vand.u32 127, %v59_v11  ;;  %vm31_vm6 = vcmp.ne.s32.totalorder %v201_v7, 4294967196  ;;  %v80_v34 = vld [vmem:[%s246_s2 + $0x8] sm:$0xff] }
   0x4   :  { %v117_v5 = vsel %vm30_vm1, %v184_v4, 0.0  ;;  %v85_v9 = vld [vmem:[%s248_s3] sm:$0x1]  ;;  %v118_v35 = vsel %vm31_vm6, %v80_v34, 0.0 }
   0x5   :  { %119 = vst.msk [vmem:[%s247_s5] sm:$0xff] %vm114_vm2, %v117_v5  ;;  %v87_v10 = vsel %vm86_vm3, %v85_v9, 0.0  ;;  %v132_v14 = vld [vmem:[%s248_s3] ss:$0 sm:$0xff] }
   0x6   :  { %120 = vst.msk [vmem:[%s247_s5 + $0x8] sm:$0xff] %vm114_vm2, %v118_v35 }
   0xb   :  { %65 = vperm.xlu1 %130, %v201_v7   ;;  %41 = vmax.xlane.f32.xlu0 %v40_v8 }
  0x13   :  { %88 = vadd.xlane.f32.xlu0 %v87_v10 }
  0x75   :  { %v63_v13 = vpop.permute.xlu1 %62 }
  0x76   :  { %v39_v15 = vpop.xlane.xlu0 %38  ;;  %vm67_vm4 = vcmp.eq.s32.totalorder %v60_v12, %v63_v13 }
  0x77   :  { %v43_v16 = vsub.f32 %v19_v0, %v39_v15 }
  0x79   :  { %v45_v17 = vmul.f32 1.442695, %v43_v16  ;;  %v69_v18 = vsel %vm67_vm4, %v43_v16, 0.0  ;;  %v93_v19 = vmul.f32 %v132_v14, %v43_v16 }
  0x7a   :  { %v71_v20 = vsel %vm36_vm0, %v69_v18, 0.0 }
  0x7b   :  { %133 = vpow2.f32 %v45_v17  ;;  %72 = vadd.xlane.f32.xlu1 %v71_v20  ;;  %v95_v21 = vsel %vm36_vm0, %v93_v19, 0.0 }
  0x7c   :  { %96 = vadd.xlane.f32.xlu0 %v95_v21 }
  0x7d   :  { %v66_v28 = vpop.permute.xlu1 %65 }
  0x7e   :  { %v42_v22 = vpop.xlane.xlu0 %41  ;;  %vm68_vm5 = vcmp.eq.s32.totalorder %v60_v12, %v66_v28 }
  0x7f   :  { %v44_v23 = vsub.f32 %v20_v6, %v42_v22 }
  0x81   :  { %v134_v24 = vpop.eup %133  ;;  %v47_v25 = vmul.f32 1.442695, %v44_v23  ;;  %v70_v30 = vsel %vm68_vm5, %v44_v23, 0.0  ;;  %v94_v32 = vmul.f32 %v132_v14, %v44_v23 }
  0x82   :  { %v49_v26 = vsel %vm36_vm0, %v134_v24, 0.0  ;;  %v74_v31 = vsel %vm36_vm0, %v70_v30, 0.0 }
  0x83   :  { %135 = vpow2.f32 %v47_v25  ;;  %50 = vadd.xlane.f32.xlu2 %v49_v26  ;;  %v98_v33 = vsel %vm36_vm0, %v94_v32, 0.0 }
  0x86   :  { %v89_v37 = vpop.xlane.xlu0 %88 }
  0x87   :  { %v101_v38 = vperm.slane %v89_v37, 0 }
  0x89   :  { %v136_v27 = vpop.eup %135 }
  0x8a   :  { %v52_v29 = vsel %vm36_vm0, %v136_v27, 0.0 }
  0x8b   :  { %53 = vadd.xlane.f32.xlu2 %v52_v29 }
  0x93   :  { %75 = vadd.xlane.f32.xlu2 %v74_v31 }
  0x9b   :  { %99 = vadd.xlane.f32.xlu2 %v98_v33 }
  0xee   :  { %v73_v42 = vpop.xlane.xlu1 %72 }
  0xef   :  { %v97_v45 = vpop.xlane.xlu0 %96 }
  0xf6   :  { %v51_v36 = vpop.xlane.xlu2 %50 }
  0xf7   :  { %137 = vlog2.f32 %v51_v36 }
  0xfd   :  { %v138_v39 = vpop.eup %137 }
  0xfe   :  { %v56_v40 = vmul.f32 0.6931472, %v138_v39  ;;  %v54_v41 = vpop.xlane.xlu2 %53 }
  0xff   :  { %139 = vlog2.f32 %v54_v41 }
 0x100   :  { %v77_v43 = vsub.f32 %v56_v40, %v73_v42  ;;  %v102_v44 = vmul.f32 %v101_v38, %v56_v40 }
 0x102   :  { %v81_v46 = vmul.f32 %v184_v4, %v77_v43  ;;  %v104_v47 = vsub.f32 %v102_v44, %v97_v45 }
 0x104   :  { %v83_v48 = vsel %vm30_vm1, %v81_v46, 0.0  ;;  %v106_v49 = vsel %vm30_vm1, %v104_v47, 0.0 }
 0x105   :  { %v140_v50 = vpop.eup %139  ;;  %v108_v51 = vmul.f32 0.9, %v83_v48  ;;  %v110_v52 = vmul.f32 0.003125, %v106_v49 }
 0x106   :  { %v58_v53 = vmul.f32 0.6931472, %v140_v50  ;;  %v76_v54 = vpop.xlane.xlu2 %75 }
 0x107   :  { %v112_v55 = vadd.f32 %v110_v52, %v108_v51 }
 0x108   :  { %v78_v56 = vsub.f32 %v58_v53, %v76_v54  ;;  %v103_v58 = vmul.f32 %v101_v38, %v58_v53 }
 0x109   :  { %115 = vst.msk [vmem:[%s249_s4] sm:$0xff] %vm114_vm2, %v112_v55 }
 0x10a   :  { %v82_v57 = vmul.f32 %v80_v34, %v78_v56 }
 0x10c   :  { %v84_v60 = vsel %vm31_vm6, %v82_v57, 0.0 }
 0x10d   :  { %v109_v63 = vmul.f32 0.9, %v84_v60 }
 0x10e   :  { %v100_v59 = vpop.xlane.xlu2 %99 }
 0x10f   :  { %v105_v61 = vsub.f32 %v103_v58, %v100_v59 }
 0x111   :  { %v107_v62 = vsel %vm31_vm6, %v105_v61, 0.0 }
 0x112   :  { %v111_v0 = vmul.f32 0.003125, %v107_v62 }
 0x114   :  { %v113_v1 = vadd.f32 %v111_v0, %v109_v63 }
 0x116   :  { %116 = vst.msk [vmem:[%s249_s4 + $0x8] sm:$0xff] %vm114_vm2, %v113_v1 }

</bundles_post_ra>
